<compile_context>
chip_gen: v7x
topology: tpu7x:2x2x1
jax: 0.10.0
libtpu: 0.0.40
codegen_flags: <defaults>
</compile_context>

<pallas_src>
import functools

import jax
import jax.numpy as jnp
from jax import lax
from jax.experimental import pallas as pl
from jax.experimental.pallas import tpu as pltpu

_LANES = 128
_SUBLANES = 8
# Per-grid-step byte budget across BOTH input streams (per pipeline buffer).
_TARGET_STEP_BYTES = 8 << 20  # ~8 MiB/step => ~16 MiB of double-buffered input VMEM


def _cdiv(a, b):
    return -(-a // b)


def _round_up(a, b):
    return _cdiv(a, b) * b


def _make_dice_kernel(*, s_blk, k_per_split, r_total, needs_mask):
    """Streaming per-row reduction kernel.

    grid = (split sp, row-tile i, reduction-tile k), k innermost ("arbitrary").
      p_ref / t_ref       : (B, s_blk, 128) input blocks.
      inter_ref / den_ref : (B, 1, 128) lane-dense per-row partials (resident
                            across k, written once on the last k step).
      inter_acc / den_acc : (B, acc_rows, 128) f32 scratch accumulators.
    """

    def kernel(p_ref, t_ref, inter_ref, den_ref, inter_acc, den_acc):
        sp = pl.program_id(0)
        k = pl.program_id(2)

        @pl.when(k == 0)
        def _init():
            inter_acc[...] = jnp.zeros_like(inter_acc)
            den_acc[...] = jnp.zeros_like(den_acc)

        p = p_ref[...].astype(jnp.float32)  # (B, s_blk, 128)
        t = t_ref[...].astype(jnp.float32)

        if needs_mask:
            # Static-R mask over the (·,128)-chunk axis.  Zeroes (a) the ragged
            # tail of the last real block and (b) fully out-of-range blocks from
            # the clamped split overshoot.  Out-of-bounds block contents are
            # unspecified, so this mask is mandatory, not optional.
            chunk0 = (sp * k_per_split + k) * s_blk
            sub = lax.broadcasted_iota(jnp.int32, p.shape, 1)
            valid = (chunk0 + sub) < r_total
            p = jnp.where(valid, p, 0.0)
            t = jnp.where(valid, t, 0.0)

        b, s_dim, l = p.shape
        if s_dim % _SUBLANES == 0:
            # Tile-aligned reshape (B, S, 128) -> (B, S/8, 8, 128); summing the
            # tile axis is pure VALU vreg adds into the (B, 8, 128) accumulator.
            def reduce_chunks(x):
                return jnp.sum(x.reshape(b, s_dim // _SUBLANES, _SUBLANES, l), axis=1)
        else:
            # Only reachable when the block covers a full (short) row.
            def reduce_chunks(x):
                return jnp.sum(x, axis=1, keepdims=True)

        inter_acc[...] += reduce_chunks(p * t)   # numerator stream
        den_acc[...] += reduce_chunks(p + t)     # fused denominator stream

        @pl.when(k == pl.num_programs(2) - 1)
        def _finalize():
            # One tiny cross-sublane reduce per row; lane-dense (B, 1, 128) store.
            inter_ref[...] = jnp.sum(inter_acc[...], axis=1, keepdims=True)
            den_ref[...] = jnp.sum(den_acc[...], axis=1, keepdims=True)

    return kernel


@functools.partial(
    jax.jit, static_argnames=("smooth", "p", "reduction", "target_step_bytes"))
def binary_dice_loss(predict, target, smooth=1.0, p=1, reduction="mean",
                     target_step_bytes=_TARGET_STEP_BYTES):
    """Pallas implementation of BinaryDiceLoss.forward.

    NOTE: the reference forward ignores `p` (no exponent in the denominator);
    this matches that behaviour exactly.  `reduction` in {'mean','sum','none'};
    the reference forward corresponds to 'mean'.
    """
    assert predict.shape[0] == target.shape[0], \
        "predict & target batch size don't match"
    n = predict.shape[0]
    pf = predict.reshape(n, -1)
    tf = target.reshape(n, -1)

    # Keep narrow dtypes narrow (the kernel is HBM-bound and casts per block).
    def _canon(x):
        if x.dtype in (jnp.dtype(jnp.float32), jnp.dtype(jnp.bfloat16)):
            return x
        if x.dtype in (jnp.dtype(jnp.bool_), jnp.dtype(jnp.int8), jnp.dtype(jnp.uint8)):
            return x.astype(jnp.bfloat16)  # exact for 0/1 masks and 8-bit ints
        return x.astype(jnp.float32)

    pf, tf = _canon(pf), _canon(tf)
    m = pf.shape[1]

    # ---- lane-dense [N, R, 128] view; pad only the M % 128 remainder ---------
    m128 = _round_up(m, _LANES)
    if m128 != m:
        # Rare fallback (zeros are sum-neutral).  Aligned M pays zero extra HBM
        # traffic; the ragged sublane-tile remainder is masked in-kernel instead.
        pf = jnp.pad(pf, ((0, 0), (0, m128 - m)))
        tf = jnp.pad(tf, ((0, 0), (0, m128 - m)))
    r = m128 // _LANES
    pf = pf.reshape(n, r, _LANES)
    tf = tf.reshape(n, r, _LANES)

    esz_p = jnp.dtype(pf.dtype).itemsize
    esz_t = jnp.dtype(tf.dtype).itemsize

    # ---- block sizing from a per-step byte budget over BOTH streams ----------
    chunk_bytes = _LANES * (esz_p + esz_t)             # bytes per (·,128) chunk
    chunks_budget = max(
        _SUBLANES, (target_step_bytes // chunk_bytes) // _SUBLANES * _SUBLANES)
    if chunks_budget >= 32:                            # keep big blocks 32-aligned
        chunks_budget = chunks_budget // 32 * 32       # (safe for any packed dtype)
    if r <= chunks_budget:
        s_blk = r                                      # whole row per block
        b_blk = max(1, min(n, 256, chunks_budget // _round_up(r, _SUBLANES)))
    else:
        s_blk = chunks_budget                          # multiple of 8, < r
        b_blk = 1
    num_k = _cdiv(r, s_blk)
    num_row_tiles = _cdiv(n, b_blk)

    # v7x megacore: rows are the natural parallel axis; if they collapse to one
    # tile, split the reduction axis across the two TensorCores instead and sum
    # the two partials in the epilogue.  Harmless on single-TC chips.
    n_splits = 2 if (num_row_tiles == 1 and num_k >= 2) else 1
    k_per_split = _cdiv(num_k, n_splits)
    needs_mask = (n_splits * k_per_split * s_blk) != r
    acc_rows = _SUBLANES if s_blk % _SUBLANES == 0 else 1

    def in_index(sp, i, k):
        # Clamp so split overshoot never addresses a fully out-of-bounds block;
        # the in-kernel mask zeroes any contribution from the clamped re-read.
        return (i, jnp.minimum(sp * k_per_split + k, num_k - 1), 0)

    kernel = _make_dice_kernel(s_blk=s_blk, k_per_split=k_per_split,
                               r_total=r, needs_mask=needs_mask)

    # ---- VMEM budget: double-buffered inputs + outputs + scratch, 25% slack --
    eff_s = _round_up(s_blk, _SUBLANES)                # sublane-padded footprint
    in_block_bytes = b_blk * eff_s * _LANES * (esz_p + esz_t)
    out_block_bytes = 2 * b_blk * _SUBLANES * _LANES * 4
    scratch_bytes = 2 * b_blk * _SUBLANES * _LANES * 4
    vmem_bytes = int(1.25 * (2 * in_block_bytes + 2 * out_block_bytes + scratch_bytes))
    vmem_bytes = min(max(vmem_bytes, 8 << 20), 64 << 20)

    cost = pl.CostEstimate(
        flops=4 * n * m128,   # mul+add (numerator) and add+add (denominator)
        transcendentals=0,
        bytes_accessed=n * m128 * (esz_p + esz_t) + 2 * n_splits * n * _LANES * 4,
    )

    out_inter, out_den = pl.pallas_call(
        kernel,
        out_shape=(
            jax.ShapeDtypeStruct((n_splits, n, 1, _LANES), jnp.float32),
            jax.ShapeDtypeStruct((n_splits, n, 1, _LANES), jnp.float32),
        ),
        grid_spec=pltpu.PrefetchScalarGridSpec(
            num_scalar_prefetch=0,
            grid=(n_splits, num_row_tiles, k_per_split),
            in_specs=[
                pl.BlockSpec((b_blk, s_blk, _LANES), in_index),
                pl.BlockSpec((b_blk, s_blk, _LANES), in_index),
            ],
            out_specs=(
                pl.BlockSpec((None, b_blk, 1, _LANES), lambda sp, i, k: (sp, i, 0, 0)),
                pl.BlockSpec((None, b_blk, 1, _LANES), lambda sp, i, k: (sp, i, 0, 0)),
            ),
            scratch_shapes=[
                pltpu.VMEM((b_blk, acc_rows, _LANES), jnp.float32),
                pltpu.VMEM((b_blk, acc_rows, _LANES), jnp.float32),
            ],
        ),
        compiler_params=pltpu.CompilerParams(
            dimension_semantics=("parallel", "parallel", "arbitrary"),
            vmem_limit_bytes=vmem_bytes,
        ),
        cost_estimate=cost,
    )(pf, tf)

    # Tiny per-row finish in plain JAX (n_splits x N x 128 elements).
    inter = jnp.sum(out_inter, axis=(0, 2, 3))         # (N,)
    den = jnp.sum(out_den, axis=(0, 2, 3))             # (N,)
    score = (2.0 * inter + float(smooth)) / (den + float(smooth))
    loss = 1.0 - score
    if reduction == "mean":
        return jnp.mean(loss)    # == 1 - score.sum()/N (the reference forward)
    if reduction == "sum":
        return jnp.sum(loss)
    if reduction == "none":
        return loss
    raise ValueError(f"Unexpected reduction {reduction}")


def _reference(predict, target, smooth=1.0):
    n = predict.shape[0]
    pf = predict.reshape(n, -1).astype(jnp.float32)
    tf = target.reshape(n, -1).astype(jnp.float32)
    inter = jnp.sum(pf * tf, axis=1)
    score = (2.0 * inter + smooth) / (jnp.sum(pf, axis=1) + jnp.sum(tf, axis=1) + smooth)
    return 1.0 - jnp.sum(score) / n


if __name__ == "__main__":
    key = jax.random.PRNGKey(0)
    k1, k2 = jax.random.split(key)

    # 1) Aligned M (4*16*16 = 1024), f32: single-block fast path, no pad, no mask.
    x_shape = (2, 4, 16, 16)
    predict = jax.nn.sigmoid(jax.random.normal(k1, x_shape, dtype=jnp.float32))
    target = (jax.random.uniform(k2, x_shape) > 0.5).astype(jnp.float32)
    loss = jax.block_until_ready(binary_dice_loss(predict, target, smooth=1.0, p=1))
    ref = _reference(predict, target, smooth=1.0)
    assert jnp.allclose(loss, ref, rtol=1e-5, atol=1e-5), (loss, ref)

    # 2) Non-aligned M (1683) + bf16 predict: 128-pad fallback, full-row block.
    y_shape = (2, 3, 33, 17)
    predict2 = jax.nn.sigmoid(jax.random.normal(k1, y_shape)).astype(jnp.bfloat16)
    target2 = (jax.random.uniform(k2, y_shape) > 0.5).astype(jnp.float32)
    loss2 = jax.block_until_ready(binary_dice_loss(predict2, target2))
    ref2 = _reference(predict2, target2)
    assert jnp.allclose(loss2, ref2, rtol=1e-5, atol=1e-5), (loss2, ref2)

    # 3) N=1, forced small blocks: exercises the megacore split of the reduction
    #    axis, the index clamp, and the in-kernel ragged-tail mask.
    z_shape = (1, 113, 128)
    predict3 = jax.nn.sigmoid(jax.random.normal(k1, z_shape, dtype=jnp.float32))
    target3 = (jax.random.uniform(k2, z_shape) > 0.5).astype(jnp.float32)
    loss3 = jax.block_until_ready(
        binary_dice_loss(predict3, target3, target_step_bytes=8 * 1024))
    ref3 = _reference(predict3, target3)
    assert jnp.allclose(loss3, ref3, rtol=1e-5, atol=1e-5), (loss3, ref3)

    # 4) Small-M / many rows: row-batched blocks with a ragged last row tile.
    w_shape = (10, 2, 8, 8)
    predict4 = jax.nn.sigmoid(jax.random.normal(k1, w_shape, dtype=jnp.float32))
    target4 = (jax.random.uniform(k2, w_shape) > 0.5).astype(jnp.float32)
    loss4 = jax.block_until_ready(
        binary_dice_loss(predict4, target4, target_step_bytes=64 * 1024))
    ref4 = _reference(predict4, target4)
    assert jnp.allclose(loss4, ref4, rtol=1e-5, atol=1e-5), (loss4, ref4)

    # 5) Multi-step reduction per row (accumulator path) with a ragged last block.
    v_shape = (3, 130, 128)
    predict5 = jax.nn.sigmoid(jax.random.normal(k1, v_shape, dtype=jnp.float32))
    target5 = (jax.random.uniform(k2, v_shape) > 0.5).astype(jnp.float32)
    loss5 = jax.block_until_ready(
        binary_dice_loss(predict5, target5, target_step_bytes=8 * 1024))
    ref5 = _reference(predict5, target5)
    assert jnp.allclose(loss5, ref5, rtol=1e-5, atol=1e-5), (loss5, ref5)

    print("KERNEL_OK")
</pallas_src>

<mosaic_0001>
module attributes {stable_mosaic.version = 11 : i64} {
  func.func @kernel(%arg0: i32, %arg1: i32, %arg2: i32, %arg3: memref<2x8x128xf32, #tpu.memory_space<vmem>>, %arg4: memref<2x8x128xf32, #tpu.memory_space<vmem>>, %arg5: memref<1x2x1x128xf32, #tpu.memory_space<vmem>>, %arg6: memref<1x2x1x128xf32, #tpu.memory_space<vmem>>, %arg7: memref<2x8x128xf32, #tpu.memory_space<vmem>>, %arg8: memref<2x8x128xf32, #tpu.memory_space<vmem>>) attributes {dimension_semantics = [#tpu.dimension_semantics<parallel>, #tpu.dimension_semantics<parallel>, #tpu.dimension_semantics<arbitrary>], iteration_bounds = array<i64: 1, 1, 1>, scalar_prefetch = 0 : i64, scratch_operands = 2 : i64, tpu.core_type = #tpu.core_type<tc>, window_params = [{transform_indices = @transform_0, window_bounds = array<i64: 2, 8, 128>}, {transform_indices = @transform_1, window_bounds = array<i64: 2, 8, 128>}, {transform_indices = @transform_2, window_bounds = array<i64: 1, 2, 1, 128>}, {transform_indices = @transform_3, window_bounds = array<i64: 1, 2, 1, 128>}]} {
    %c0_i32 = arith.constant 0 : i32
    %0 = arith.cmpi eq, %arg2, %c0_i32 : i32
    %1 = arith.extui %0 : i1 to i32
    %c0_i32_0 = arith.constant 0 : i32
    %2 = arith.cmpi ne, %1, %c0_i32_0 : i32
    scf.if %2 {
      %cst_21 = arith.constant 0.000000e+00 : f32
      %20 = vector.broadcast %cst_21 : f32 to vector<2x8x128xf32>
      %c0_22 = arith.constant 0 : index
      %c0_23 = arith.constant 0 : index
      %c0_24 = arith.constant 0 : index
      %21 = vector.load %arg7[%c0_22, %c0_23, %c0_24] : memref<2x8x128xf32, #tpu.memory_space<vmem>>, vector<2x8x128xf32>
      tpu.vector_store %arg7[%c0_22, %c0_23, %c0_24], %20 {strides = array<i32>} : memref<2x8x128xf32, #tpu.memory_space<vmem>>, vector<2x8x128xf32>,
      %cst_25 = arith.constant 0.000000e+00 : f32
      %22 = vector.broadcast %cst_25 : f32 to vector<2x8x128xf32>
      %c0_26 = arith.constant 0 : index
      %c0_27 = arith.constant 0 : index
      %c0_28 = arith.constant 0 : index
      %23 = vector.load %arg8[%c0_26, %c0_27, %c0_28] : memref<2x8x128xf32, #tpu.memory_space<vmem>>, vector<2x8x128xf32>
      tpu.vector_store %arg8[%c0_26, %c0_27, %c0_28], %22 {strides = array<i32>} : memref<2x8x128xf32, #tpu.memory_space<vmem>>, vector<2x8x128xf32>,
    } else {
    }
    %c0 = arith.constant 0 : index
    %c0_1 = arith.constant 0 : index
    %c0_2 = arith.constant 0 : index
    %3 = vector.load %arg3[%c0, %c0_1, %c0_2] : memref<2x8x128xf32, #tpu.memory_space<vmem>>, vector<2x8x128xf32>
    %c0_3 = arith.constant 0 : index
    %c0_4 = arith.constant 0 : index
    %c0_5 = arith.constant 0 : index
    %4 = vector.load %arg4[%c0_3, %c0_4, %c0_5] : memref<2x8x128xf32, #tpu.memory_space<vmem>>, vector<2x8x128xf32>
    %c0_6 = arith.constant 0 : index
    %c0_7 = arith.constant 0 : index
    %c0_8 = arith.constant 0 : index
    %5 = vector.load %arg7[%c0_6, %c0_7, %c0_8] : memref<2x8x128xf32, #tpu.memory_space<vmem>>, vector<2x8x128xf32>
    %6 = arith.mulf %3, %4 : vector<2x8x128xf32>
    %7 = vector.shape_cast %6 : vector<2x8x128xf32> to vector<2x1x8x128xf32>
    %cst = arith.constant dense<0.000000e+00> : vector<2x8x128xf32>
    %8 = vector.multi_reduction <add>, %7, %cst [1] : vector<2x1x8x128xf32> to vector<2x8x128xf32>
    %9 = arith.addf %5, %8 : vector<2x8x128xf32>
    %c0_9 = arith.constant 0 : index
    %c0_10 = arith.constant 0 : index
    %c0_11 = arith.constant 0 : index
    %10 = vector.load %arg7[%c0_9, %c0_10, %c0_11] : memref<2x8x128xf32, #tpu.memory_space<vmem>>, vector<2x8x128xf32>
    tpu.vector_store %arg7[%c0_9, %c0_10, %c0_11], %9 {strides = array<i32>} : memref<2x8x128xf32, #tpu.memory_space<vmem>>, vector<2x8x128xf32>,
    %c0_12 = arith.constant 0 : index
    %c0_13 = arith.constant 0 : index
    %c0_14 = arith.constant 0 : index
    %11 = vector.load %arg8[%c0_12, %c0_13, %c0_14] : memref<2x8x128xf32, #tpu.memory_space<vmem>>, vector<2x8x128xf32>
    %12 = arith.addf %3, %4 : vector<2x8x128xf32>
    %13 = vector.shape_cast %12 : vector<2x8x128xf32> to vector<2x1x8x128xf32>
    %cst_15 = arith.constant dense<0.000000e+00> : vector<2x8x128xf32>
    %14 = vector.multi_reduction <add>, %13, %cst_15 [1] : vector<2x1x8x128xf32> to vector<2x8x128xf32>
    %15 = arith.addf %11, %14 : vector<2x8x128xf32>
    %c0_16 = arith.constant 0 : index
    %c0_17 = arith.constant 0 : index
    %c0_18 = arith.constant 0 : index
    %16 = vector.load %arg8[%c0_16, %c0_17, %c0_18] : memref<2x8x128xf32, #tpu.memory_space<vmem>>, vector<2x8x128xf32>
    tpu.vector_store %arg8[%c0_16, %c0_17, %c0_18], %15 {strides = array<i32>} : memref<2x8x128xf32, #tpu.memory_space<vmem>>, vector<2x8x128xf32>,
    %c0_i32_19 = arith.constant 0 : i32
    %17 = arith.cmpi eq, %arg2, %c0_i32_19 : i32
    %18 = arith.extui %17 : i1 to i32
    %c0_i32_20 = arith.constant 0 : i32
    %19 = arith.cmpi ne, %18, %c0_i32_20 : i32
    scf.if %19 {
      %c0_21 = arith.constant 0 : index
      %c0_22 = arith.constant 0 : index
      %c0_23 = arith.constant 0 : index
      %20 = vector.load %arg7[%c0_21, %c0_22, %c0_23] : memref<2x8x128xf32, #tpu.memory_space<vmem>>, vector<2x8x128xf32>
      %cst_24 = arith.constant dense<0.000000e+00> : vector<2x128xf32>
      %21 = vector.multi_reduction <add>, %20, %cst_24 [1] : vector<2x8x128xf32> to vector<2x128xf32>
      %22 = vector.shape_cast %21 : vector<2x128xf32> to vector<2x1x128xf32>
      %c0_25 = arith.constant 0 : index
      %c0_26 = arith.constant 0 : index
      %c0_27 = arith.constant 0 : index
      %c0_28 = arith.constant 0 : index
      %23 = vector.load %arg5[%c0_25, %c0_26, %c0_27, %c0_28] : memref<1x2x1x128xf32, #tpu.memory_space<vmem>>, vector<1x2x1x128xf32>
      %24 = vector.shape_cast %23 : vector<1x2x1x128xf32> to vector<2x1x128xf32>
      %25 = vector.shape_cast %22 : vector<2x1x128xf32> to vector<1x2x1x128xf32>
      tpu.vector_store %arg5[%c0_25, %c0_26, %c0_27, %c0_28], %25 {strides = array<i32>} : memref<1x2x1x128xf32, #tpu.memory_space<vmem>>, vector<1x2x1x128xf32>,
      %c0_29 = arith.constant 0 : index
      %c0_30 = arith.constant 0 : index
      %c0_31 = arith.constant 0 : index
      %26 = vector.load %arg8[%c0_29, %c0_30, %c0_31] : memref<2x8x128xf32, #tpu.memory_space<vmem>>, vector<2x8x128xf32>
      %cst_32 = arith.constant dense<0.000000e+00> : vector<2x128xf32>
      %27 = vector.multi_reduction <add>, %26, %cst_32 [1] : vector<2x8x128xf32> to vector<2x128xf32>
      %28 = vector.shape_cast %27 : vector<2x128xf32> to vector<2x1x128xf32>
      %c0_33 = arith.constant 0 : index
      %c0_34 = arith.constant 0 : index
      %c0_35 = arith.constant 0 : index
      %c0_36 = arith.constant 0 : index
      %29 = vector.load %arg6[%c0_33, %c0_34, %c0_35, %c0_36] : memref<1x2x1x128xf32, #tpu.memory_space<vmem>>, vector<1x2x1x128xf32>
      %30 = vector.shape_cast %29 : vector<1x2x1x128xf32> to vector<2x1x128xf32>
      %31 = vector.shape_cast %28 : vector<2x1x128xf32> to vector<1x2x1x128xf32>
      tpu.vector_store %arg6[%c0_33, %c0_34, %c0_35, %c0_36], %31 {strides = array<i32>} : memref<1x2x1x128xf32, #tpu.memory_space<vmem>>, vector<1x2x1x128xf32>,
    } else {
    }
    return
  }
  func.func @transform_0(%arg0: i32, %arg1: i32, %arg2: i32) -> (i32, i32, i32) {
    %c1_i32 = arith.constant 1 : i32
    %0 = arith.muli %arg0, %c1_i32 : i32
    %1 = arith.addi %0, %arg2 : i32
    %c0_i32 = arith.constant 0 : i32
    %2 = arith.minsi %1, %c0_i32 : i32
    %c0_i32_0 = arith.constant 0 : i32
    %c0_i32_1 = arith.constant 0 : i32
    return %arg1, %2, %c0_i32_0 : i32, i32, i32
  }
  func.func @transform_1(%arg0: i32, %arg1: i32, %arg2: i32) -> (i32, i32, i32) {
    %c1_i32 = arith.constant 1 : i32
    %0 = arith.muli %arg0, %c1_i32 : i32
    %1 = arith.addi %0, %arg2 : i32
    %c0_i32 = arith.constant 0 : i32
    %2 = arith.minsi %1, %c0_i32 : i32
    %c0_i32_0 = arith.constant 0 : i32
    %c0_i32_1 = arith.constant 0 : i32
    return %arg1, %2, %c0_i32_0 : i32, i32, i32
  }
  func.func @transform_2(%arg0: i32, %arg1: i32, %arg2: i32) -> (i32, i32, i32, i32) {
    %c0_i32 = arith.constant 0 : i32
    %c0_i32_0 = arith.constant 0 : i32
    %c0_i32_1 = arith.constant 0 : i32
    return %arg0, %arg1, %c0_i32, %c0_i32_0 : i32, i32, i32, i32
  }
  func.func @transform_3(%arg0: i32, %arg1: i32, %arg2: i32) -> (i32, i32, i32, i32) {
    %c0_i32 = arith.constant 0 : i32
    %c0_i32_0 = arith.constant 0 : i32
    %c0_i32_1 = arith.constant 0 : i32
    return %arg0, %arg1, %c0_i32, %c0_i32_0 : i32, i32, i32, i32
  }
}

</mosaic_0001>

<bundles_post_ra>
// kernel: binary_dice_loss.1
= control target key start
LH: loop header
LB: loop body
LE: loop exit
PB: predicated region body
PF: predicated region fallthrough
CT: control target
= control target key end

     0   :  { %s198_s0 = inlined_call_operand.vmem [shape: f32[2,8,128], index: 0, kind: input, shape index: {}]   ;;  %s199_s1 = inlined_call_operand.vmem [shape: f32[2,8,128], index: 1, kind: input, shape index: {}]   ;;  %s200_s2 = inlined_call_operand.vmem [shape: f32[1,2,1,128], index: 2, kind: output, shape index: {0}]   ;;  %s201_s3 = inlined_call_operand.vmem [shape: f32[1,2,1,128], index: 3, kind: output, shape index: {1}]  }
   0x1   :  { %v75_v0 = vld [vmem:[%s198_s0] sm:$0xff]  ;;  %v76_v2 = vld [vmem:[%s198_s0 + $0x8] sm:$0xff] }
   0x2   :  { %v77_v1 = vld [vmem:[%s199_s1] sm:$0xff]  ;;  %v78_v4 = vld [vmem:[%s199_s1 + $0x8] sm:$0xff] }
   0x3   :  { %v81_v3 = vmul.f32 %v77_v1, %v75_v0  ;;  %v91_v5 = vadd.f32 %v77_v1, %v75_v0  ;;  %v82_v6 = vmul.f32 %v78_v4, %v76_v2  ;;  %v92_v7 = vadd.f32 %v78_v4, %v76_v2 }
   0x5   :  { %v104_v8 = vrot.slane %v81_v3, 4  ;;  %v120_v9 = vrot.slane %v91_v5, 4  ;;  %v110_v10 = vrot.slane %v82_v6, 4  ;;  %v126_v11 = vrot.slane %v92_v7, 4 }
   0x7   :  { %v105_v12 = vadd.f32 %v104_v8, %v81_v3  ;;  %v121_v13 = vadd.f32 %v120_v9, %v91_v5  ;;  %v111_v14 = vadd.f32 %v110_v10, %v82_v6  ;;  %v127_v15 = vadd.f32 %v126_v11, %v92_v7 }
   0x9   :  { %v106_v16 = vrot.slane %v105_v12, 2  ;;  %v122_v17 = vrot.slane %v121_v13, 2  ;;  %v112_v18 = vrot.slane %v111_v14, 2  ;;  %v128_v19 = vrot.slane %v127_v15, 2 }
   0xb   :  { %v107_v20 = vadd.f32 %v106_v16, %v105_v12  ;;  %v123_v21 = vadd.f32 %v122_v17, %v121_v13  ;;  %v113_v22 = vadd.f32 %v112_v18, %v111_v14  ;;  %v129_v23 = vadd.f32 %v128_v19, %v127_v15 }
   0xd   :  { %v108_v24 = vrot.slane %v107_v20, 1  ;;  %v124_v25 = vrot.slane %v123_v21, 1  ;;  %v114_v26 = vrot.slane %v113_v22, 1  ;;  %v130_v27 = vrot.slane %v129_v23, 1 }
   0xf   :  { %v109_v28 = vadd.f32 %v108_v24, %v107_v20  ;;  %v125_v29 = vadd.f32 %v124_v25, %v123_v21  ;;  %v115_v30 = vadd.f32 %v114_v26, %v113_v22  ;;  %v131_v31 = vadd.f32 %v130_v27, %v129_v23 }
  0x11   :  { %116 = vst [vmem:[%s200_s2] sm:$0x1] %v109_v28  ;;  %132 = vst [vmem:[%s201_s3] sm:$0x1] %v125_v29 }
  0x12   :  { %117 = vst [vmem:[%s200_s2 + $0x1] sm:$0x1] %v115_v30  ;;  %133 = vst [vmem:[%s201_s3 + $0x1] sm:$0x1] %v131_v31 }

</bundles_post_ra>
